<compile_context>
chip_gen: v7x
topology: tpu7x:2x2x1
jax: 0.10.0
libtpu: 0.0.40
codegen_flags: <defaults>
</compile_context>

<pallas_src>
import functools

import jax
import jax.numpy as jnp
from jax import lax
from jax.experimental import pallas as pl
from jax.experimental.pallas import tpu as pltpu

LANES = 128        # lane width of a vreg
CHUNK = 8          # rows per register-resident inner chunk (one f32 vreg)
INNER_UNROLL = 2   # chunks in flight; midpoint form is associative so 2 chunks
                   # fill the 4 VALU slots without vreg spills
ROW_TARGET = 4096  # ~2 MiB per stream buffer; 3 streams x 2 buffers ~= 12 MiB


def _round_up(a, b):
    return (a + b - 1) // b * b


def _vq_kernel(w_ref, x_dst_ref, x_src_ref, qst_ref, loss_ref, *,
               chunk_rows, tie_break_exact):
    # w_ref:     SMEM (K,)        scalar codebook (sorted unless tie_break_exact)
    # x_dst_ref: VMEM (R, 128)    input pixels at the OUTPUT positions
    # x_src_ref: VMEM (R, 128)    input pixels feeding each output position
    #                             (the torch view/permute shuffle)
    # qst_ref:   VMEM (R, 128)    straight-through quantized output
    # loss_ref:  VMEM (1, 8, 128) per-block partial sums of squared error
    block_rows = x_dst_ref.shape[0]
    n_chunks = block_rows // chunk_rows
    K = w_ref.shape[0]

    # Hoist the K SMEM scalar reads and the midpoint/delta scalar math out of
    # the chunk loop -- scalar-unit work, done once per grid step.
    ws = [w_ref[k] for k in range(K)]
    if (not tie_break_exact) and K > 1:
        mids = [(ws[k] + ws[k + 1]) * 0.5 for k in range(K - 1)]
        deltas = [ws[k + 1] - ws[k] for k in range(K - 1)]

    def chunk_body(c, acc):
        r0 = pl.multiple_of(c * chunk_rows, chunk_rows)
        rows = pl.ds(r0, chunk_rows)
        xs = x_src_ref[rows, :].astype(jnp.float32)
        xd = x_dst_ref[rows, :].astype(jnp.float32)

        if tie_break_exact or K == 1:
            # Exact torch semantics: strict `<` keeps the FIRST minimum,
            # matching dist.min(-1) tie-break (codebook in original order).
            best_d = (xs - ws[0]) ** 2
            best_q = jnp.full_like(xs, ws[0])
            for k in range(1, K):
                d = (xs - ws[k]) ** 2
                take = d < best_d
                best_q = jnp.where(take, ws[k], best_q)
                best_d = jnp.where(take, d, best_d)
        else:
            # Sorted-codebook midpoint form (default, ~1.7x fewer VALU ops).
            # NOTE: a pixel sitting EXACTLY on a midpoint picks the lower-valued
            # code, which may differ from torch's first-index tie-break between
            # the two equidistant codes; use tie_break_exact=True for bit-exact
            # tie handling (measure-zero event for continuous inputs).
            n_par = 4                      # 4 independent partial sums (ILP)
            parts = [None] * n_par
            for k in range(K - 1):
                term = jnp.where(xs > mids[k], deltas[k], 0.0)
                j = k % n_par
                parts[j] = term if parts[j] is None else parts[j] + term
            tot = None
            for p in parts:
                if p is not None:
                    tot = p if tot is None else tot + p
            best_q = ws[0] + tot

        # Straight-through forward value: x + (q - x); the residual t is reused
        # for the loss so the epilogue is one sub, one add, one fma per element.
        t = best_q - xd
        qst_ref[rows, :] = (xd + t).astype(qst_ref.dtype)
        return acc + t * t

    acc = lax.fori_loop(0, n_chunks, chunk_body,
                        jnp.zeros((chunk_rows, LANES), jnp.float32),
                        unroll=INNER_UNROLL)

    # Per-block partial loss (reduced to a scalar in the JAX wrapper).
    loss_ref[0] = acc


def vector_quantizer_forward(x, weight, commitment_cost=0.25, *,
                             tie_break_exact=False):
    """Forward pass of the Sonnet-style per-pixel VectorQuantizer.

    Returns (quantized_st, q_latent_loss, e_latent_loss).  Like the torch
    module's forward, `commitment_cost` is NOT applied here; the caller
    combines q_latent_loss + commitment_cost * e_latent_loss.
    """
    B, C, H, W = x.shape
    E, K = weight.shape
    assert E == 1, "torch module's .view(shifted_shape) requires embedding_dim == 1"
    N = B * C * H * W

    # --- tiling: lane-dense (rows, 128) stream, biggest block <= ROW_TARGET ---
    M_raw = pl.cdiv(N, LANES)                       # rows actually needed
    g = pl.cdiv(M_raw, ROW_TARGET)                  # grid steps
    block_rows = _round_up(pl.cdiv(M_raw, g), CHUNK)
    M = g * block_rows                              # padded row count
    pad_n = M * LANES - N

    w_flat = weight.reshape(K).astype(jnp.float32)
    w_kernel = w_flat if tie_break_exact else jnp.sort(w_flat)

    x_dst_flat = x.reshape(-1)
    # torch: weight.t().index_select(0, argmin.view(-1)).view([B,H,W,C]).permute(0,3,1,2)
    # => output position (b,c,h,w) is fed by input flat index ((b*H+h)*W+w)*C + c.
    # allow_input_fusion below lets XLA fold this permute into the Pallas input
    # DMA instead of materializing a transposed copy of x.
    x_src_flat = jnp.transpose(x.reshape(B, H, W, C), (0, 3, 1, 2)).reshape(-1)

    if pad_n:
        # Pad with an exact codebook value: it quantizes to itself, so padded
        # elements contribute exactly 0 to the loss and need no in-kernel mask.
        # TODO(synk): for bf16 inputs the rounded pad value is only approximately
        # a codebook entry (O(1e-6/N) loss bias); mask instead if that matters.
        pad = jnp.full((pad_n,), w_kernel[0], dtype=x.dtype)
        x_dst_flat = jnp.concatenate([x_dst_flat, pad])
        x_src_flat = jnp.concatenate([x_src_flat, pad])

    x_dst = x_dst_flat.reshape(M, LANES)
    x_src = x_src_flat.reshape(M, LANES)

    kernel = functools.partial(_vq_kernel, chunk_rows=CHUNK,
                               tie_break_exact=tie_break_exact)

    vec_ops_per_elem = 5 * K if tie_break_exact else 3 * (K - 1) + 4
    cost = pl.CostEstimate(flops=int(vec_ops_per_elem) * M * LANES,
                           transcendentals=0,
                           bytes_accessed=12 * M * LANES)

    qst_flat, loss_parts = pl.pallas_call(
        kernel,
        out_shape=(
            jax.ShapeDtypeStruct((M, LANES), x.dtype),
            jax.ShapeDtypeStruct((g, CHUNK, LANES), jnp.float32),
        ),
        grid_spec=pltpu.PrefetchScalarGridSpec(
            num_scalar_prefetch=0,
            grid=(g,),
            in_specs=[
                pl.BlockSpec(memory_space=pltpu.MemorySpace.SMEM),     # codebook
                pl.BlockSpec((block_rows, LANES), lambda i: (i, 0)),   # x_dst
                pl.BlockSpec((block_rows, LANES), lambda i: (i, 0)),   # x_src
            ],
            out_specs=[
                pl.BlockSpec((block_rows, LANES), lambda i: (i, 0)),   # quantized (ST)
                pl.BlockSpec((1, CHUNK, LANES), lambda i: (i, 0, 0)),  # loss partials
            ],
        ),
        compiler_params=pltpu.CompilerParams(
            # No grid-resident accumulator -> axis is parallel (v7x 2 TCs).
            dimension_semantics=("parallel",),
            # Let XLA fold the x_src permute into the Pallas input DMA.
            allow_input_fusion=[False, False, True],
            # 3 streams x 2 buffers x ~2 MiB; raise scoped VMEM so v5e
            # (16 MiB default) also accepts 4096-row tiles.
            vmem_limit_bytes=32 * 1024 * 1024,
        ),
        cost_estimate=cost,
    )(w_kernel, x_dst, x_src)

    mse = jnp.sum(loss_parts) / N
    quantized_st = qst_flat.reshape(-1)[:N].reshape(B, C, H, W)
    # TODO(synk): straight-through / detach gradient routing needs a custom_vjp
    # around this forward; values below are exact for the forward pass.
    q_latent_loss = mse   # F.mse_loss(quantized, input.detach())  (same fwd value)
    e_latent_loss = mse   # F.mse_loss(input, quantized.detach())  (same fwd value)
    return quantized_st, q_latent_loss, e_latent_loss


def _reference(x, weight):
    # literal transcription of the torch forward (forward values only)
    B, C, H, W = x.shape
    x_expanded = x[..., None]                       # [B,C,H,W,1]
    dist = (x_expanded - weight) ** 2               # broadcast vs [1,K]
    argmin = jnp.argmin(dist, axis=-1)              # [B,C,H,W]
    sel = weight.T[argmin.reshape(-1)]              # [N,1]
    quantized = sel.reshape(B, H, W, C).transpose(0, 3, 1, 2)
    e = jnp.mean((x - quantized) ** 2)
    q = jnp.mean((quantized - x) ** 2)
    return x + (quantized - x), q, e


if __name__ == "__main__":
    key = jax.random.PRNGKey(0)
    k1, k2 = jax.random.split(key)

    B, C, H, W = 2, 4, 16, 16
    embedding_dim, num_embeddings = 1, 16

    x = jax.random.normal(k1, (B, C, H, W), dtype=jnp.float32)
    # deterministic stand-in for nn.Parameter(torch.rand(E, K))
    weight = jax.random.uniform(k2, (embedding_dim, num_embeddings), dtype=jnp.float32)

    qst, q_loss, e_loss = vector_quantizer_forward(x, weight)
    jax.block_until_ready((qst, q_loss, e_loss))

    q_ref, ql_ref, el_ref = _reference(x, weight)
    assert jnp.allclose(qst, q_ref, atol=1e-6), "quantized mismatch"
    assert jnp.allclose(q_loss, ql_ref, atol=1e-6), "q_latent_loss mismatch"
    assert jnp.allclose(e_loss, el_ref, atol=1e-6), "e_latent_loss mismatch"
    print("KERNEL_OK")
</pallas_src>

<mosaic_0001>
module attributes {stable_mosaic.version = 11 : i64} {
  func.func @_vq_kernel(%arg0: i32, %arg1: memref<16xf32, #tpu.memory_space<smem>>, %arg2: memref<16x128xf32, #tpu.memory_space<vmem>>, %arg3: memref<16x128xf32, #tpu.memory_space<vmem>>, %arg4: memref<16x128xf32, #tpu.memory_space<vmem>>, %arg5: memref<1x8x128xf32, #tpu.memory_space<vmem>>) attributes {dimension_semantics = [#tpu.dimension_semantics<parallel>], iteration_bounds = array<i64: 1>, scalar_prefetch = 0 : i64, scratch_operands = 0 : i64, tpu.core_type = #tpu.core_type<tc>, window_params = [{transform_indices = @transform_0, window_bounds = array<i64: 16>}, {transform_indices = @transform_1, window_bounds = array<i64: 16, 128>}, {transform_indices = @transform_2, window_bounds = array<i64: 16, 128>}, {transform_indices = @transform_3, window_bounds = array<i64: 16, 128>}, {transform_indices = @transform_4, window_bounds = array<i64: 1, 8, 128>}]} {
    %c0 = arith.constant 0 : index
    %0 = memref.load %arg1[%c0] : memref<16xf32, #tpu.memory_space<smem>>
    %c1 = arith.constant 1 : index
    %1 = memref.load %arg1[%c1] : memref<16xf32, #tpu.memory_space<smem>>
    %c2 = arith.constant 2 : index
    %2 = memref.load %arg1[%c2] : memref<16xf32, #tpu.memory_space<smem>>
    %c3 = arith.constant 3 : index
    %3 = memref.load %arg1[%c3] : memref<16xf32, #tpu.memory_space<smem>>
    %c4 = arith.constant 4 : index
    %4 = memref.load %arg1[%c4] : memref<16xf32, #tpu.memory_space<smem>>
    %c5 = arith.constant 5 : index
    %5 = memref.load %arg1[%c5] : memref<16xf32, #tpu.memory_space<smem>>
    %c6 = arith.constant 6 : index
    %6 = memref.load %arg1[%c6] : memref<16xf32, #tpu.memory_space<smem>>
    %c7 = arith.constant 7 : index
    %7 = memref.load %arg1[%c7] : memref<16xf32, #tpu.memory_space<smem>>
    %c8 = arith.constant 8 : index
    %8 = memref.load %arg1[%c8] : memref<16xf32, #tpu.memory_space<smem>>
    %c9 = arith.constant 9 : index
    %9 = memref.load %arg1[%c9] : memref<16xf32, #tpu.memory_space<smem>>
    %c10 = arith.constant 10 : index
    %10 = memref.load %arg1[%c10] : memref<16xf32, #tpu.memory_space<smem>>
    %c11 = arith.constant 11 : index
    %11 = memref.load %arg1[%c11] : memref<16xf32, #tpu.memory_space<smem>>
    %c12 = arith.constant 12 : index
    %12 = memref.load %arg1[%c12] : memref<16xf32, #tpu.memory_space<smem>>
    %c13 = arith.constant 13 : index
    %13 = memref.load %arg1[%c13] : memref<16xf32, #tpu.memory_space<smem>>
    %c14 = arith.constant 14 : index
    %14 = memref.load %arg1[%c14] : memref<16xf32, #tpu.memory_space<smem>>
    %c15 = arith.constant 15 : index
    %15 = memref.load %arg1[%c15] : memref<16xf32, #tpu.memory_space<smem>>
    %16 = arith.addf %0, %1 : f32
    %cst = arith.constant 5.000000e-01 : f32
    %17 = arith.mulf %16, %cst : f32
    %18 = arith.addf %1, %2 : f32
    %cst_0 = arith.constant 5.000000e-01 : f32
    %19 = arith.mulf %18, %cst_0 : f32
    %20 = arith.addf %2, %3 : f32
    %cst_1 = arith.constant 5.000000e-01 : f32
    %21 = arith.mulf %20, %cst_1 : f32
    %22 = arith.addf %3, %4 : f32
    %cst_2 = arith.constant 5.000000e-01 : f32
    %23 = arith.mulf %22, %cst_2 : f32
    %24 = arith.addf %4, %5 : f32
    %cst_3 = arith.constant 5.000000e-01 : f32
    %25 = arith.mulf %24, %cst_3 : f32
    %26 = arith.addf %5, %6 : f32
    %cst_4 = arith.constant 5.000000e-01 : f32
    %27 = arith.mulf %26, %cst_4 : f32
    %28 = arith.addf %6, %7 : f32
    %cst_5 = arith.constant 5.000000e-01 : f32
    %29 = arith.mulf %28, %cst_5 : f32
    %30 = arith.addf %7, %8 : f32
    %cst_6 = arith.constant 5.000000e-01 : f32
    %31 = arith.mulf %30, %cst_6 : f32
    %32 = arith.addf %8, %9 : f32
    %cst_7 = arith.constant 5.000000e-01 : f32
    %33 = arith.mulf %32, %cst_7 : f32
    %34 = arith.addf %9, %10 : f32
    %cst_8 = arith.constant 5.000000e-01 : f32
    %35 = arith.mulf %34, %cst_8 : f32
    %36 = arith.addf %10, %11 : f32
    %cst_9 = arith.constant 5.000000e-01 : f32
    %37 = arith.mulf %36, %cst_9 : f32
    %38 = arith.addf %11, %12 : f32
    %cst_10 = arith.constant 5.000000e-01 : f32
    %39 = arith.mulf %38, %cst_10 : f32
    %40 = arith.addf %12, %13 : f32
    %cst_11 = arith.constant 5.000000e-01 : f32
    %41 = arith.mulf %40, %cst_11 : f32
    %42 = arith.addf %13, %14 : f32
    %cst_12 = arith.constant 5.000000e-01 : f32
    %43 = arith.mulf %42, %cst_12 : f32
    %44 = arith.addf %14, %15 : f32
    %cst_13 = arith.constant 5.000000e-01 : f32
    %45 = arith.mulf %44, %cst_13 : f32
    %46 = arith.subf %1, %0 : f32
    %47 = arith.subf %2, %1 : f32
    %48 = arith.subf %3, %2 : f32
    %49 = arith.subf %4, %3 : f32
    %50 = arith.subf %5, %4 : f32
    %51 = arith.subf %6, %5 : f32
    %52 = arith.subf %7, %6 : f32
    %53 = arith.subf %8, %7 : f32
    %54 = arith.subf %9, %8 : f32
    %55 = arith.subf %10, %9 : f32
    %56 = arith.subf %11, %10 : f32
    %57 = arith.subf %12, %11 : f32
    %58 = arith.subf %13, %12 : f32
    %59 = arith.subf %14, %13 : f32
    %60 = arith.subf %15, %14 : f32
    %cst_14 = arith.constant 0.000000e+00 : f32
    %61 = vector.broadcast %cst_14 : f32 to vector<8x128xf32>
    %c0_i32 = arith.constant 0 : i32
    %c8_i32 = arith.constant 8 : i32
    %62 = arith.muli %c0_i32, %c8_i32 : i32
    %63 = tpu.assume_multiple %62, 8 : i32
    %64 = arith.index_cast %63 : i32 to index
    %c0_15 = arith.constant 0 : index
    %65 = vector.load %arg3[%64, %c0_15] : memref<16x128xf32, #tpu.memory_space<vmem>>, vector<8x128xf32>
    %66 = arith.index_cast %63 : i32 to index
    %c0_16 = arith.constant 0 : index
    %67 = vector.load %arg2[%66, %c0_16] : memref<16x128xf32, #tpu.memory_space<vmem>>, vector<8x128xf32>
    %68 = vector.broadcast %17 : f32 to vector<8x128xf32>
    %69 = arith.cmpf ogt, %65, %68 : vector<8x128xf32>
    %cst_17 = arith.constant 0.000000e+00 : f32
    %70 = vector.broadcast %46 : f32 to vector<8x128xf32>
    %71 = vector.broadcast %cst_17 : f32 to vector<8x128xf32>
    %72 = arith.select %69, %70, %71 : vector<8x128xi1>, vector<8x128xf32>
    %73 = vector.broadcast %19 : f32 to vector<8x128xf32>
    %74 = arith.cmpf ogt, %65, %73 : vector<8x128xf32>
    %cst_18 = arith.constant 0.000000e+00 : f32
    %75 = vector.broadcast %47 : f32 to vector<8x128xf32>
    %76 = vector.broadcast %cst_18 : f32 to vector<8x128xf32>
    %77 = arith.select %74, %75, %76 : vector<8x128xi1>, vector<8x128xf32>
    %78 = vector.broadcast %21 : f32 to vector<8x128xf32>
    %79 = arith.cmpf ogt, %65, %78 : vector<8x128xf32>
    %cst_19 = arith.constant 0.000000e+00 : f32
    %80 = vector.broadcast %48 : f32 to vector<8x128xf32>
    %81 = vector.broadcast %cst_19 : f32 to vector<8x128xf32>
    %82 = arith.select %79, %80, %81 : vector<8x128xi1>, vector<8x128xf32>
    %83 = vector.broadcast %23 : f32 to vector<8x128xf32>
    %84 = arith.cmpf ogt, %65, %83 : vector<8x128xf32>
    %cst_20 = arith.constant 0.000000e+00 : f32
    %85 = vector.broadcast %49 : f32 to vector<8x128xf32>
    %86 = vector.broadcast %cst_20 : f32 to vector<8x128xf32>
    %87 = arith.select %84, %85, %86 : vector<8x128xi1>, vector<8x128xf32>
    %88 = vector.broadcast %25 : f32 to vector<8x128xf32>
    %89 = arith.cmpf ogt, %65, %88 : vector<8x128xf32>
    %cst_21 = arith.constant 0.000000e+00 : f32
    %90 = vector.broadcast %50 : f32 to vector<8x128xf32>
    %91 = vector.broadcast %cst_21 : f32 to vector<8x128xf32>
    %92 = arith.select %89, %90, %91 : vector<8x128xi1>, vector<8x128xf32>
    %93 = arith.addf %72, %92 : vector<8x128xf32>
    %94 = vector.broadcast %27 : f32 to vector<8x128xf32>
    %95 = arith.cmpf ogt, %65, %94 : vector<8x128xf32>
    %cst_22 = arith.constant 0.000000e+00 : f32
    %96 = vector.broadcast %51 : f32 to vector<8x128xf32>
    %97 = vector.broadcast %cst_22 : f32 to vector<8x128xf32>
    %98 = arith.select %95, %96, %97 : vector<8x128xi1>, vector<8x128xf32>
    %99 = arith.addf %77, %98 : vector<8x128xf32>
    %100 = vector.broadcast %29 : f32 to vector<8x128xf32>
    %101 = arith.cmpf ogt, %65, %100 : vector<8x128xf32>
    %cst_23 = arith.constant 0.000000e+00 : f32
    %102 = vector.broadcast %52 : f32 to vector<8x128xf32>
    %103 = vector.broadcast %cst_23 : f32 to vector<8x128xf32>
    %104 = arith.select %101, %102, %103 : vector<8x128xi1>, vector<8x128xf32>
    %105 = arith.addf %82, %104 : vector<8x128xf32>
    %106 = vector.broadcast %31 : f32 to vector<8x128xf32>
    %107 = arith.cmpf ogt, %65, %106 : vector<8x128xf32>
    %cst_24 = arith.constant 0.000000e+00 : f32
    %108 = vector.broadcast %53 : f32 to vector<8x128xf32>
    %109 = vector.broadcast %cst_24 : f32 to vector<8x128xf32>
    %110 = arith.select %107, %108, %109 : vector<8x128xi1>, vector<8x128xf32>
    %111 = arith.addf %87, %110 : vector<8x128xf32>
    %112 = vector.broadcast %33 : f32 to vector<8x128xf32>
    %113 = arith.cmpf ogt, %65, %112 : vector<8x128xf32>
    %cst_25 = arith.constant 0.000000e+00 : f32
    %114 = vector.broadcast %54 : f32 to vector<8x128xf32>
    %115 = vector.broadcast %cst_25 : f32 to vector<8x128xf32>
    %116 = arith.select %113, %114, %115 : vector<8x128xi1>, vector<8x128xf32>
    %117 = arith.addf %93, %116 : vector<8x128xf32>
    %118 = vector.broadcast %35 : f32 to vector<8x128xf32>
    %119 = arith.cmpf ogt, %65, %118 : vector<8x128xf32>
    %cst_26 = arith.constant 0.000000e+00 : f32
    %120 = vector.broadcast %55 : f32 to vector<8x128xf32>
    %121 = vector.broadcast %cst_26 : f32 to vector<8x128xf32>
    %122 = arith.select %119, %120, %121 : vector<8x128xi1>, vector<8x128xf32>
    %123 = arith.addf %99, %122 : vector<8x128xf32>
    %124 = vector.broadcast %37 : f32 to vector<8x128xf32>
    %125 = arith.cmpf ogt, %65, %124 : vector<8x128xf32>
    %cst_27 = arith.constant 0.000000e+00 : f32
    %126 = vector.broadcast %56 : f32 to vector<8x128xf32>
    %127 = vector.broadcast %cst_27 : f32 to vector<8x128xf32>
    %128 = arith.select %125, %126, %127 : vector<8x128xi1>, vector<8x128xf32>
    %129 = arith.addf %105, %128 : vector<8x128xf32>
    %130 = vector.broadcast %39 : f32 to vector<8x128xf32>
    %131 = arith.cmpf ogt, %65, %130 : vector<8x128xf32>
    %cst_28 = arith.constant 0.000000e+00 : f32
    %132 = vector.broadcast %57 : f32 to vector<8x128xf32>
    %133 = vector.broadcast %cst_28 : f32 to vector<8x128xf32>
    %134 = arith.select %131, %132, %133 : vector<8x128xi1>, vector<8x128xf32>
    %135 = arith.addf %111, %134 : vector<8x128xf32>
    %136 = vector.broadcast %41 : f32 to vector<8x128xf32>
    %137 = arith.cmpf ogt, %65, %136 : vector<8x128xf32>
    %cst_29 = arith.constant 0.000000e+00 : f32
    %138 = vector.broadcast %58 : f32 to vector<8x128xf32>
    %139 = vector.broadcast %cst_29 : f32 to vector<8x128xf32>
    %140 = arith.select %137, %138, %139 : vector<8x128xi1>, vector<8x128xf32>
    %141 = arith.addf %117, %140 : vector<8x128xf32>
    %142 = vector.broadcast %43 : f32 to vector<8x128xf32>
    %143 = arith.cmpf ogt, %65, %142 : vector<8x128xf32>
    %cst_30 = arith.constant 0.000000e+00 : f32
    %144 = vector.broadcast %59 : f32 to vector<8x128xf32>
    %145 = vector.broadcast %cst_30 : f32 to vector<8x128xf32>
    %146 = arith.select %143, %144, %145 : vector<8x128xi1>, vector<8x128xf32>
    %147 = arith.addf %123, %146 : vector<8x128xf32>
    %148 = vector.broadcast %45 : f32 to vector<8x128xf32>
    %149 = arith.cmpf ogt, %65, %148 : vector<8x128xf32>
    %cst_31 = arith.constant 0.000000e+00 : f32
    %150 = vector.broadcast %60 : f32 to vector<8x128xf32>
    %151 = vector.broadcast %cst_31 : f32 to vector<8x128xf32>
    %152 = arith.select %149, %150, %151 : vector<8x128xi1>, vector<8x128xf32>
    %153 = arith.addf %129, %152 : vector<8x128xf32>
    %154 = arith.addf %141, %147 : vector<8x128xf32>
    %155 = arith.addf %154, %153 : vector<8x128xf32>
    %156 = arith.addf %155, %135 : vector<8x128xf32>
    %157 = vector.broadcast %0 : f32 to vector<8x128xf32>
    %158 = arith.addf %157, %156 : vector<8x128xf32>
    %159 = arith.subf %158, %67 : vector<8x128xf32>
    %160 = arith.addf %67, %159 : vector<8x128xf32>
    %161 = arith.index_cast %63 : i32 to index
    %c0_32 = arith.constant 0 : index
    %162 = vector.load %arg4[%161, %c0_32] : memref<16x128xf32, #tpu.memory_space<vmem>>, vector<8x128xf32>
    tpu.vector_store %arg4[%161, %c0_32], %160 {strides = array<i32>} : memref<16x128xf32, #tpu.memory_space<vmem>>, vector<8x128xf32>,
    %163 = arith.mulf %159, %159 : vector<8x128xf32>
    %164 = arith.addf %61, %163 : vector<8x128xf32>
    %c1_i32 = arith.constant 1 : i32
    %c8_i32_33 = arith.constant 8 : i32
    %165 = arith.muli %c1_i32, %c8_i32_33 : i32
    %166 = tpu.assume_multiple %165, 8 : i32
    %167 = arith.index_cast %166 : i32 to index
    %c0_34 = arith.constant 0 : index
    %168 = vector.load %arg3[%167, %c0_34] : memref<16x128xf32, #tpu.memory_space<vmem>>, vector<8x128xf32>
    %169 = arith.index_cast %166 : i32 to index
    %c0_35 = arith.constant 0 : index
    %170 = vector.load %arg2[%169, %c0_35] : memref<16x128xf32, #tpu.memory_space<vmem>>, vector<8x128xf32>
    %171 = vector.broadcast %17 : f32 to vector<8x128xf32>
    %172 = arith.cmpf ogt, %168, %171 : vector<8x128xf32>
    %cst_36 = arith.constant 0.000000e+00 : f32
    %173 = vector.broadcast %46 : f32 to vector<8x128xf32>
    %174 = vector.broadcast %cst_36 : f32 to vector<8x128xf32>
    %175 = arith.select %172, %173, %174 : vector<8x128xi1>, vector<8x128xf32>
    %176 = vector.broadcast %19 : f32 to vector<8x128xf32>
    %177 = arith.cmpf ogt, %168, %176 : vector<8x128xf32>
    %cst_37 = arith.constant 0.000000e+00 : f32
    %178 = vector.broadcast %47 : f32 to vector<8x128xf32>
    %179 = vector.broadcast %cst_37 : f32 to vector<8x128xf32>
    %180 = arith.select %177, %178, %179 : vector<8x128xi1>, vector<8x128xf32>
    %181 = vector.broadcast %21 : f32 to vector<8x128xf32>
    %182 = arith.cmpf ogt, %168, %181 : vector<8x128xf32>
    %cst_38 = arith.constant 0.000000e+00 : f32
    %183 = vector.broadcast %48 : f32 to vector<8x128xf32>
    %184 = vector.broadcast %cst_38 : f32 to vector<8x128xf32>
    %185 = arith.select %182, %183, %184 : vector<8x128xi1>, vector<8x128xf32>
    %186 = vector.broadcast %23 : f32 to vector<8x128xf32>
    %187 = arith.cmpf ogt, %168, %186 : vector<8x128xf32>
    %cst_39 = arith.constant 0.000000e+00 : f32
    %188 = vector.broadcast %49 : f32 to vector<8x128xf32>
    %189 = vector.broadcast %cst_39 : f32 to vector<8x128xf32>
    %190 = arith.select %187, %188, %189 : vector<8x128xi1>, vector<8x128xf32>
    %191 = vector.broadcast %25 : f32 to vector<8x128xf32>
    %192 = arith.cmpf ogt, %168, %191 : vector<8x128xf32>
    %cst_40 = arith.constant 0.000000e+00 : f32
    %193 = vector.broadcast %50 : f32 to vector<8x128xf32>
    %194 = vector.broadcast %cst_40 : f32 to vector<8x128xf32>
    %195 = arith.select %192, %193, %194 : vector<8x128xi1>, vector<8x128xf32>
    %196 = arith.addf %175, %195 : vector<8x128xf32>
    %197 = vector.broadcast %27 : f32 to vector<8x128xf32>
    %198 = arith.cmpf ogt, %168, %197 : vector<8x128xf32>
    %cst_41 = arith.constant 0.000000e+00 : f32
    %199 = vector.broadcast %51 : f32 to vector<8x128xf32>
    %200 = vector.broadcast %cst_41 : f32 to vector<8x128xf32>
    %201 = arith.select %198, %199, %200 : vector<8x128xi1>, vector<8x128xf32>
    %202 = arith.addf %180, %201 : vector<8x128xf32>
    %203 = vector.broadcast %29 : f32 to vector<8x128xf32>
    %204 = arith.cmpf ogt, %168, %203 : vector<8x128xf32>
    %cst_42 = arith.constant 0.000000e+00 : f32
    %205 = vector.broadcast %52 : f32 to vector<8x128xf32>
    %206 = vector.broadcast %cst_42 : f32 to vector<8x128xf32>
    %207 = arith.select %204, %205, %206 : vector<8x128xi1>, vector<8x128xf32>
    %208 = arith.addf %185, %207 : vector<8x128xf32>
    %209 = vector.broadcast %31 : f32 to vector<8x128xf32>
    %210 = arith.cmpf ogt, %168, %209 : vector<8x128xf32>
    %cst_43 = arith.constant 0.000000e+00 : f32
    %211 = vector.broadcast %53 : f32 to vector<8x128xf32>
    %212 = vector.broadcast %cst_43 : f32 to vector<8x128xf32>
    %213 = arith.select %210, %211, %212 : vector<8x128xi1>, vector<8x128xf32>
    %214 = arith.addf %190, %213 : vector<8x128xf32>
    %215 = vector.broadcast %33 : f32 to vector<8x128xf32>
    %216 = arith.cmpf ogt, %168, %215 : vector<8x128xf32>
    %cst_44 = arith.constant 0.000000e+00 : f32
    %217 = vector.broadcast %54 : f32 to vector<8x128xf32>
    %218 = vector.broadcast %cst_44 : f32 to vector<8x128xf32>
    %219 = arith.select %216, %217, %218 : vector<8x128xi1>, vector<8x128xf32>
    %220 = arith.addf %196, %219 : vector<8x128xf32>
    %221 = vector.broadcast %35 : f32 to vector<8x128xf32>
    %222 = arith.cmpf ogt, %168, %221 : vector<8x128xf32>
    %cst_45 = arith.constant 0.000000e+00 : f32
    %223 = vector.broadcast %55 : f32 to vector<8x128xf32>
    %224 = vector.broadcast %cst_45 : f32 to vector<8x128xf32>
    %225 = arith.select %222, %223, %224 : vector<8x128xi1>, vector<8x128xf32>
    %226 = arith.addf %202, %225 : vector<8x128xf32>
    %227 = vector.broadcast %37 : f32 to vector<8x128xf32>
    %228 = arith.cmpf ogt, %168, %227 : vector<8x128xf32>
    %cst_46 = arith.constant 0.000000e+00 : f32
    %229 = vector.broadcast %56 : f32 to vector<8x128xf32>
    %230 = vector.broadcast %cst_46 : f32 to vector<8x128xf32>
    %231 = arith.select %228, %229, %230 : vector<8x128xi1>, vector<8x128xf32>
    %232 = arith.addf %208, %231 : vector<8x128xf32>
    %233 = vector.broadcast %39 : f32 to vector<8x128xf32>
    %234 = arith.cmpf ogt, %168, %233 : vector<8x128xf32>
    %cst_47 = arith.constant 0.000000e+00 : f32
    %235 = vector.broadcast %57 : f32 to vector<8x128xf32>
    %236 = vector.broadcast %cst_47 : f32 to vector<8x128xf32>
    %237 = arith.select %234, %235, %236 : vector<8x128xi1>, vector<8x128xf32>
    %238 = arith.addf %214, %237 : vector<8x128xf32>
    %239 = vector.broadcast %41 : f32 to vector<8x128xf32>
    %240 = arith.cmpf ogt, %168, %239 : vector<8x128xf32>
    %cst_48 = arith.constant 0.000000e+00 : f32
    %241 = vector.broadcast %58 : f32 to vector<8x128xf32>
    %242 = vector.broadcast %cst_48 : f32 to vector<8x128xf32>
    %243 = arith.select %240, %241, %242 : vector<8x128xi1>, vector<8x128xf32>
    %244 = arith.addf %220, %243 : vector<8x128xf32>
    %245 = vector.broadcast %43 : f32 to vector<8x128xf32>
    %246 = arith.cmpf ogt, %168, %245 : vector<8x128xf32>
    %cst_49 = arith.constant 0.000000e+00 : f32
    %247 = vector.broadcast %59 : f32 to vector<8x128xf32>
    %248 = vector.broadcast %cst_49 : f32 to vector<8x128xf32>
    %249 = arith.select %246, %247, %248 : vector<8x128xi1>, vector<8x128xf32>
    %250 = arith.addf %226, %249 : vector<8x128xf32>
    %251 = vector.broadcast %45 : f32 to vector<8x128xf32>
    %252 = arith.cmpf ogt, %168, %251 : vector<8x128xf32>
    %cst_50 = arith.constant 0.000000e+00 : f32
    %253 = vector.broadcast %60 : f32 to vector<8x128xf32>
    %254 = vector.broadcast %cst_50 : f32 to vector<8x128xf32>
    %255 = arith.select %252, %253, %254 : vector<8x128xi1>, vector<8x128xf32>
    %256 = arith.addf %232, %255 : vector<8x128xf32>
    %257 = arith.addf %244, %250 : vector<8x128xf32>
    %258 = arith.addf %257, %256 : vector<8x128xf32>
    %259 = arith.addf %258, %238 : vector<8x128xf32>
    %260 = vector.broadcast %0 : f32 to vector<8x128xf32>
    %261 = arith.addf %260, %259 : vector<8x128xf32>
    %262 = arith.subf %261, %170 : vector<8x128xf32>
    %263 = arith.addf %170, %262 : vector<8x128xf32>
    %264 = arith.index_cast %166 : i32 to index
    %c0_51 = arith.constant 0 : index
    %265 = vector.load %arg4[%264, %c0_51] : memref<16x128xf32, #tpu.memory_space<vmem>>, vector<8x128xf32>
    tpu.vector_store %arg4[%264, %c0_51], %263 {strides = array<i32>} : memref<16x128xf32, #tpu.memory_space<vmem>>, vector<8x128xf32>,
    %266 = arith.mulf %262, %262 : vector<8x128xf32>
    %267 = arith.addf %164, %266 : vector<8x128xf32>
    %c2_i32 = arith.constant 2 : i32
    %c0_52 = arith.constant 0 : index
    %c0_53 = arith.constant 0 : index
    %c0_54 = arith.constant 0 : index
    %268 = vector.load %arg5[%c0_52, %c0_53, %c0_54] : memref<1x8x128xf32, #tpu.memory_space<vmem>>, vector<1x8x128xf32>
    %269 = vector.shape_cast %268 : vector<1x8x128xf32> to vector<8x128xf32>
    %270 = vector.shape_cast %267 : vector<8x128xf32> to vector<1x8x128xf32>
    tpu.vector_store %arg5[%c0_52, %c0_53, %c0_54], %270 {strides = array<i32>} : memref<1x8x128xf32, #tpu.memory_space<vmem>>, vector<1x8x128xf32>,
    return
  }
  func.func @transform_0(%arg0: i32) -> i32 {
    %c0_i32 = arith.constant 0 : i32
    %c0_i32_0 = arith.constant 0 : i32
    return %c0_i32 : i32
  }
  func.func @transform_1(%arg0: i32) -> (i32, i32) {
    %c0_i32 = arith.constant 0 : i32
    %c0_i32_0 = arith.constant 0 : i32
    return %arg0, %c0_i32 : i32, i32
  }
  func.func @transform_2(%arg0: i32) -> (i32, i32) {
    %c0_i32 = arith.constant 0 : i32
    %c0_i32_0 = arith.constant 0 : i32
    return %arg0, %c0_i32 : i32, i32
  }
  func.func @transform_3(%arg0: i32) -> (i32, i32) {
    %c0_i32 = arith.constant 0 : i32
    %c0_i32_0 = arith.constant 0 : i32
    return %arg0, %c0_i32 : i32, i32
  }
  func.func @transform_4(%arg0: i32) -> (i32, i32, i32) {
    %c0_i32 = arith.constant 0 : i32
    %c0_i32_0 = arith.constant 0 : i32
    %c0_i32_1 = arith.constant 0 : i32
    return %arg0, %c0_i32, %c0_i32_0 : i32, i32, i32
  }
}

</mosaic_0001>

<bundles_post_ra>
// kernel: tpu_custom_call.1
= control target key start
LH: loop header
LB: loop body
LE: loop exit
PB: predicated region body
PF: predicated region fallthrough
CT: control target
= control target key end

     0   :  { %s870_s0 = inlined_call_operand.hbm [shape: f32[16], index: 0, kind: input, shape index: {}]   ;;  %s871_s1 = inlined_call_operand.hbm [shape: f32[16,128], index: 1, kind: input, shape index: {}]   ;;  %s872_s2 = inlined_call_operand.hbm [shape: f32[16,128], index: 2, kind: input, shape index: {}]   ;;  %s873_s3 = inlined_call_operand.hbm [shape: f32[16,128], index: 3, kind: output, shape index: {0}]   ;;  %s874_s4 = inlined_call_operand.hbm [shape: f32[1,8,128], index: 4, kind: output, shape index: {1}]  }
   0x1   :  { %878 = sst [smem:[#allocation17_spill]] %s874_s4 }
   0x2   :  { %10 = vsyncpa [#allocation5], 0 }
   0x3   :  { %11 = vsyncpa [#allocation3], 0 }
   0x4   :  { %12 = vsyncpa [#allocation8], 0 }
   0x5   :  { %13 = vsyncpa [#allocation4], 0 }
   0x6   :  { %14 = vsyncpa [#allocation11], 0  ;;  %s312_s17 = scalar_lea.hbm %s870_s0, 16 }
   0x7   :  { %p313_p0 = scmp.ne.s32.totalorder %s870_s0, %s312_s17  ;;  %p316_p1 = scmp.lt.u32.totalorder %s312_s17, %s870_s0 }
   0x9   :  { %p318_p2 = pnand %p316_p1, %p313_p0 }
   0xb   :  { %321 = shalt.err (!%p318_p2)
}
   0xc   :  { %s420_s22 = smov [#allocation2]   ;;  %s421_s25 = smov [#allocation6]  }
   0xd   :  { %22 = dma.hbm_to_smem %s870_s0, 16, %s420_s22, [#allocation5]  }
   0xe   :  { %s28_s26 = sshll.u32 %s421_s25, 4  ;;  %s322_s29 = scalar_lea.hbm %s871_s1, 256  ;;  %s29_s26 = int_to_ptr.vmem [resolvable:$true] %s28_s26 }
   0xf   :  { %p323_p3 = scmp.ne.s32.totalorder %s871_s1, %s322_s29  ;;  %p326_p4 = scmp.lt.u32.totalorder %s322_s29, %s871_s1 }
  0x11   :  { %p328_p5 = pnand %p326_p4, %p323_p3 }
  0x13   :  { %331 = shalt.err (!%p328_p5)
}
  0x14   :  { %s332_s8 = scalar_lea.vmem %s29_s26, 256  ;;  %p337_p7 = scmp.lt.s32.totalorder %s29_s26, %s29_s26 }
  0x15   :  { %p333_p6 = scmp.ne.s32.totalorder %s29_s26, %s332_s8  ;;  %p338_p8 = scmp.lt.s32.totalorder %s332_s8, %s332_s8 }
  0x17   :  { %p339_p9 = por %p338_p8, %p337_p7 }
  0x19   :  { %p340_p10 = pnand %p339_p9, %p333_p6 }
  0x1b   :  { %343 = shalt.err (!%p340_p10)
}
  0x1c   :  { %s875_s0 = smov 128   ;;  %s876_s9 = smov 8  }
  0x1d   :  { %34 = dma.hbm_to_vmem [thread:$0]  %s871_s1, 256, %s29_s26, [#allocation3], %s875_s0, %s875_s0, %s876_s9  }
  0x1e   :  { %s424_s12 = smov [#allocation7]   ;;  %s344_s16 = scalar_lea.hbm %s872_s2, 256 }
  0x1f   :  { %s40_s13 = sshll.u32 %s424_s12, 4  ;;  %p345_p11 = scmp.ne.s32.totalorder %s872_s2, %s344_s16  ;;  %s41_s13 = int_to_ptr.vmem [resolvable:$true] %s40_s13 }
  0x20   :  { %p348_p12 = scmp.lt.u32.totalorder %s344_s16, %s872_s2 }
  0x22   :  { %p350_p13 = pnand %p348_p12, %p345_p11 }
  0x24   :  { %353 = shalt.err (!%p350_p13)
}
  0x25   :  { %s354_s21 = scalar_lea.vmem %s41_s13, 256  ;;  %p359_p1 = scmp.lt.s32.totalorder %s41_s13, %s41_s13 }
  0x26   :  { %p355_p0 = scmp.ne.s32.totalorder %s41_s13, %s354_s21  ;;  %p360_p2 = scmp.lt.s32.totalorder %s354_s21, %s354_s21 }
  0x28   :  { %p361_p3 = por %p360_p2, %p359_p1 }
  0x2a   :  { %p362_p4 = pnand %p361_p3, %p355_p0 }
  0x2c   :  { %365 = shalt.err (!%p362_p4)
}
  0x2d   :  { %46 = dma.hbm_to_vmem [thread:$0]  %s872_s2, 256, %s41_s13, [#allocation8], %s875_s0, %s875_s0, %s876_s9  }
  0x2e   :  { %410 = dma.done.wait [#allocation5], 16  }
  0x2f   :  { %411 = vsyncadd [#allocation5], 4294967280 }
  0x30   :  { %412 = dma.done.wait [#allocation3], 256  }
  0x31   :  { %413 = vsyncadd [#allocation3], 4294967040 }
  0x32   :  { %414 = dma.done.wait [#allocation8], 256  }
  0x33   :  { %415 = vsyncadd [#allocation8], 4294967040 }
  0x34   :  { %56 = sfence }
  0x35   :  { %s494_s23 = sld [smem:[#allocation2]]  ;;  %s496_s24 = sld [smem:[#allocation2 + $0x1]]  ;;  %v556_v0 = vld [vmem:[#allocation7] sm:$0xff]  ;;  %v558_v2 = vld [vmem:[#allocation7 + $0x8] sm:$0xff]  ;;  %v903_v25 = vmov 0  ;;  %v905_v26 = vmov 0 }
  0x36   :  { %s498_s25 = sld [smem:[#allocation2 + $0x2]]  ;;  %s500_s26 = sld [smem:[#allocation2 + $0x3]]  ;;  %v907_v29 = vmov 0  ;;  %v909_v31 = vmov 0  ;;  %v911_v33 = vmov 0  ;;  %v915_v36 = vmov 0 }
  0x37   :  { %s502_s2 = sld [smem:[#allocation2 + $0x4]]  ;;  %s504_s27 = sld [smem:[#allocation2 + $0x5]] }
  0x38   :  { %s506_s28 = sld [smem:[#allocation2 + $0x6]]  ;;  %s508_s29 = sld [smem:[#allocation2 + $0x7]] }
  0x39   :  { %s510_s30 = sld [smem:[#allocation2 + $0x8]]  ;;  %s512_s5 = sld [smem:[#allocation2 + $0x9]] }
  0x3a   :  { %s514_s6 = sld [smem:[#allocation2 + $0xa]]  ;;  %s516_s7 = sld [smem:[#allocation2 + $0xb]] }
  0x3b   :  { %s518_s8 = sld [smem:[#allocation2 + $0xc]]  ;;  %s520_s10 = sld [smem:[#allocation2 + $0xd]] }
  0x3c   :  { %s522_s11 = sld [smem:[#allocation2 + $0xe]]  ;;  %s73_s12 = sadd.f32 %s496_s24, %s494_s23 }
  0x3d   :  { %s526_s13 = sld [smem:[#allocation2 + $0xf]]  ;;  %s75_s14 = sadd.f32 %s498_s25, %s496_s24 }
  0x3e   :  { %s74_s15 = smul.f32 0.5, %s73_s12  ;;  %s77_s16 = sadd.f32 %s500_s26, %s498_s25 }
  0x3f   :  { %s532_s17 = smul.f32 0.5, %s75_s14  ;;  %s79_s18 = sadd.f32 %s502_s2, %s500_s26 }
  0x40   :  { %s536_s19 = smul.f32 0.5, %s77_s16  ;;  %s81_s20 = sadd.f32 %s504_s27, %s502_s2  ;;  %v120_v1 = vstv %s74_s15 }
  0x41   :  { %s540_s21 = smul.f32 0.5, %s79_s18  ;;  %s83_s1 = sadd.f32 %s506_s28, %s504_s27  ;;  %v124_v3 = vstv %s532_s17  ;;  %vm576_vm0 = vcmp.gt.f32.partialorder %v556_v0, %v120_v1  ;;  %vm583_vm1 = vcmp.gt.f32.partialorder %v558_v2, %v120_v1 }
  0x42   :  { %s544_s22 = smul.f32 0.5, %s81_s20  ;;  %s85_s12 = sadd.f32 %s508_s29, %s506_s28  ;;  %v128_v4 = vstv %s536_s19  ;;  %vm592_vm2 = vcmp.gt.f32.partialorder %v556_v0, %v124_v3  ;;  %vm603_vm4 = vcmp.gt.f32.partialorder %v558_v2, %v124_v3 }
  0x43   :  { %s548_s14 = smul.f32 0.5, %s83_s1  ;;  %s87_s0 = sadd.f32 %s510_s30, %s508_s29  ;;  %v132_v5 = vstv %s540_s21  ;;  %vm597_vm3 = vcmp.gt.f32.partialorder %v556_v0, %v128_v4  ;;  %vm618_vm6 = vcmp.gt.f32.partialorder %v558_v2, %v128_v4 }
  0x44   :  { %s552_s9 = smul.f32 0.5, %s85_s12  ;;  %s89_s16 = sadd.f32 %s512_s5, %s510_s30  ;;  %v136_v7 = vstv %s544_s22  ;;  %vm612_vm5 = vcmp.gt.f32.partialorder %v556_v0, %v132_v5  ;;  %vm623_vm7 = vcmp.gt.f32.partialorder %v558_v2, %v132_v5 }
  0x45   :  { %s560_s18 = smul.f32 0.5, %s87_s0  ;;  %s91_s20 = sadd.f32 %s514_s6, %s512_s5  ;;  %v141_v8 = vstv %s548_s14  ;;  %vm632_vm8 = vcmp.gt.f32.partialorder %v556_v0, %v136_v7  ;;  %vm643_vm10 = vcmp.gt.f32.partialorder %v558_v2, %v136_v7 }
  0x46   :  { %s566_s1 = smul.f32 0.5, %s89_s16  ;;  %s93_s12 = sadd.f32 %s516_s7, %s514_s6  ;;  %v146_v12 = vstv %s552_s9  ;;  %vm637_vm9 = vcmp.gt.f32.partialorder %v556_v0, %v141_v8  ;;  %vm659_vm12 = vcmp.gt.f32.partialorder %v558_v2, %v141_v8 }
  0x47   :  { %s571_s4 = smul.f32 0.5, %s91_s20  ;;  %s95_s15 = sadd.f32 %s518_s8, %s516_s7  ;;  %v151_v15 = vstv %s560_s18  ;;  %vm652_vm11 = vcmp.gt.f32.partialorder %v556_v0, %v146_v12  ;;  %v904_v25 = vsel %vm659_vm12, 4294967295, %v903_v25  ;;  %vm675_vm14 = vcmp.gt.f32.partialorder %v558_v2, %v146_v12 }
  0x48   :  { %s587_s0 = smul.f32 0.5, %s93_s12  ;;  %s97_s17 = sadd.f32 %s520_s10, %s518_s8  ;;  %v156_v20 = vstv %s566_s1  ;;  %vm668_vm13 = vcmp.gt.f32.partialorder %v556_v0, %v151_v15  ;;  %v908_v29 = vsel %vm675_vm14, 4294967295, %v907_v29  ;;  %vm688_vm12 = vcmp.gt.f32.partialorder %v558_v2, %v151_v15 }
  0x49   :  { %s607_s19 = smul.f32 0.5, %s95_s15  ;;  %s99_s21 = sadd.f32 %s522_s11, %s520_s10  ;;  %v161_v23 = vstv %s571_s4  ;;  %v906_v26 = vsel %vm668_vm13, 4294967295, %v905_v26  ;;  %vm682_vm15 = vcmp.gt.f32.partialorder %v556_v0, %v156_v20  ;;  %v912_v33 = vsel %vm688_vm12, 4294967295, %v911_v33 }
  0x4a   :  { %s627_s9 = smul.f32 0.5, %s97_s17  ;;  %s101_s22 = sadd.f32 %s526_s13, %s522_s11  ;;  %v166_v24 = vstv %s587_s0  ;;  %v910_v31 = vsel %vm682_vm15, 4294967295, %v909_v31  ;;  %vm695_vm14 = vcmp.gt.f32.partialorder %v556_v0, %v161_v23 }
  0x4b   :  { %s647_s14 = smul.f32 0.5, %s99_s21  ;;  %s103_s16 = ssub.f32 %s496_s24, %s494_s23  ;;  %v171_v27 = vstv %s607_s19  ;;  %vm700_vm13 = vcmp.gt.f32.partialorder %v556_v0, %v166_v24 }
  0x4c   :  { %s663_s18 = smul.f32 0.5, %s101_s22  ;;  %s104_s20 = ssub.f32 %s498_s25, %s496_s24  ;;  %v176_v28 = vstv %s627_s9  ;;  %v916_v36 = vsel %vm700_vm13, 4294967295, %v915_v36  ;;  %vm710_vm12 = vcmp.gt.f32.partialorder %v556_v0, %v171_v27  ;;  %vm720_vm13 = vcmp.gt.f32.partialorder %v558_v2, %v156_v20 }
  0x4d   :  { %s105_s4 = ssub.f32 %s500_s26, %s498_s25  ;;  %v122_v30 = vstv %s103_s16  ;;  %v181_v32 = vstv %s647_s14  ;;  %vm715_vm15 = vcmp.gt.f32.partialorder %v556_v0, %v176_v28 }
  0x4e   :  { %s106_s24 = ssub.f32 %s502_s2, %s500_s26  ;;  %v126_v34 = vstv %s104_s20  ;;  %v186_v37 = vstv %s663_s18  ;;  %v123_v38 = vsel %vm576_vm0, %v122_v30, 0.0  ;;  %vm731_vm0 = vcmp.gt.f32.partialorder %v556_v0, %v181_v32 }
  0x4f   :  { %s107_s25 = ssub.f32 %s504_s27, %s502_s2  ;;  %v130_v39 = vstv %s105_s4  ;;  %v127_v43 = vsel %vm592_vm2, %v126_v34, 0.0  ;;  %v206_v47 = vsel %vm583_vm1, %v122_v30, 0.0  ;;  %vm742_vm2 = vcmp.gt.f32.partialorder %v556_v0, %v186_v37 }
  0x50   :  { %s108_s26 = ssub.f32 %s506_s28, %s504_s27  ;;  %v131_v44 = vsel %vm597_vm3, %v130_v39, 0.0  ;;  %v134_v45 = vstv %s106_s24  ;;  %v208_v51 = vsel %vm603_vm4, %v126_v34, 0.0  ;;  %v210_v52 = vsel %vm618_vm6, %v130_v39, 0.0 }
  0x51   :  { %s109_s2 = ssub.f32 %s508_s29, %s506_s28  ;;  %v135_v48 = vsel %vm612_vm5, %v134_v45, 0.0  ;;  %v138_v49 = vstv %s107_s25  ;;  %vm751_vm1 = vcmp.gt.f32.partialorder %v558_v2, %v161_v23  ;;  %vm756_vm3 = vcmp.gt.f32.partialorder %v558_v2, %v166_v24 }
  0x52   :  { %s110_s27 = ssub.f32 %s510_s30, %s508_s29  ;;  %v139_v55 = vsel %vm632_vm8, %v138_v49, 0.0  ;;  %v143_v56 = vstv %s108_s26  ;;  %v212_v57 = vsel %vm623_vm7, %v134_v45, 0.0  ;;  %v214_v58 = vsel %vm643_vm10, %v138_v49, 0.0 }
  0x53   :  { %s111_s28 = ssub.f32 %s512_s5, %s510_s30  ;;  %v140_v59 = vadd.f32 %v139_v55, %v123_v38  ;;  %v144_v60 = vsel %vm637_vm9, %v143_v56, 0.0  ;;  %v148_v61 = vstv %s109_s2  ;;  %vm773_vm4 = vcmp.gt.f32.partialorder %v558_v2, %v171_v27  ;;  %v119_v55 = vld [vmem:[#allocation6] sm:$0xff] }
  0x54   :  { %vm778_vm5 = vcmp.gt.f32.partialorder %v558_v2, %v176_v28  ;;  %vm783_vm6 = vcmp.gt.f32.partialorder %v558_v2, %v181_v32  ;;  %s112_s29 = ssub.f32 %s514_s6, %s512_s5  ;;  %v145_v1 = vadd.f32 %v144_v60, %v127_v43  ;;  %v149_v3 = vsel %vm652_vm11, %v148_v61, 0.0  ;;  %v204_v60 = vld [vmem:[#allocation6 + $0x8] sm:$0xff] }
  0x55   :  { %v153_v4 = vstv %s110_s27  ;;  %vm937_vm7 = vnez %v904_v25  ;;  %vm794_vm8 = vcmp.gt.f32.partialorder %v558_v2, %v186_v37  ;;  %s113_s30 = ssub.f32 %s516_s7, %s514_s6  ;;  %v150_v7 = vadd.f32 %v149_v3, %v131_v44 }
  0x56   :  { %v217_v5 = vsel %vm937_vm7, %v143_v56, 0.0  ;;  %vm940_vm9 = vnez %v906_v26  ;;  %v158_v9 = vstv %s111_s28  ;;  %v215_v10 = vadd.f32 %v214_v58, %v206_v47  ;;  %s114_s5 = ssub.f32 %s518_s8, %s516_s7 }
  0x57   :  { %v154_v8 = vsel %vm940_vm9, %v153_v4, 0.0  ;;  %vm941_vm10 = vnez %v910_v31  ;;  %v163_v12 = vstv %s112_s29  ;;  %v218_v2 = vadd.f32 %v217_v5, %v208_v51  ;;  %s115_s1 = ssub.f32 %s520_s10, %s518_s8  ;;  %s425_s8 = smov [#allocation9]  }
  0x58   :  { %v159_v11 = vsel %vm941_vm10, %v158_v9, 0.0  ;;  %vm942_vm11 = vnez %v908_v29  ;;  %v155_v14 = vadd.f32 %v154_v8, %v135_v48  ;;  %v164_v16 = vsel %vm695_vm14, %v163_v12, 0.0  ;;  %s116_s6 = ssub.f32 %s522_s11, %s520_s10  ;;  %s262_s10 = sshll.u32 %s425_s8, 4  ;;  %s263_s10 = int_to_ptr.vmem [resolvable:$true] %s262_s10 }
  0x59   :  { %v220_v13 = vsel %vm942_vm11, %v148_v61, 0.0  ;;  %v160_v15 = vadd.f32 %v159_v11, %v140_v59  ;;  %v168_v17 = vstv %s113_s30  ;;  %v165_v18 = vadd.f32 %v164_v16, %v145_v1  ;;  %s117_s7 = ssub.f32 %s526_s13, %s522_s11  ;;  %s426_s11 = smov [#allocation10]  }
  0x5a   :  { %vm943_vm7 = vnez %v916_v36  ;;  %v173_v20 = vstv %s114_s5  ;;  %vm944_vm9 = vnez %v912_v33  ;;  %v178_v24 = vstv %s115_s1  ;;  %s275_s13 = sshll.u32 %s426_s11, 4  ;;  %p371_p6 = scmp.lt.s32.totalorder %s263_s10, %s263_s10  ;;  %s276_s13 = int_to_ptr.vmem [resolvable:$true] %s275_s13 }
  0x5b   :  { %v169_v19 = vsel %vm943_vm7, %v168_v17, 0.0  ;;  %v223_v21 = vsel %vm944_vm9, %v153_v4, 0.0  ;;  %v174_v23 = vsel %vm710_vm12, %v173_v20, 0.0  ;;  %v221_v25 = vadd.f32 %v220_v13, %v210_v52 }
  0x5c   :  { %v170_v22 = vadd.f32 %v169_v19, %v150_v7  ;;  %v179_v26 = vsel %vm715_vm15, %v178_v24, 0.0  ;;  %v183_v27 = vstv %s116_s6  ;;  %v224_v28 = vadd.f32 %v223_v21, %v212_v57 }
  0x5d   :  { %v226_v29 = vsel %vm720_vm13, %v158_v9, 0.0  ;;  %v180_v30 = vadd.f32 %v179_v26, %v160_v15  ;;  %v184_v31 = vsel %vm731_vm0, %v183_v27, 0.0  ;;  %v188_v32 = vstv %s117_s7 }
  0x5e   :  { %v227_v33 = vadd.f32 %v226_v29, %v215_v10  ;;  %v185_v34 = vadd.f32 %v184_v31, %v165_v18  ;;  %v189_v35 = vsel %vm742_vm2, %v188_v32, 0.0  ;;  %v229_v36 = vsel %vm751_vm1, %v163_v12, 0.0 }
  0x5f   :  { %v232_v37 = vsel %vm756_vm3, %v168_v17, 0.0  ;;  %v175_v38 = vadd.f32 %v174_v23, %v155_v14  ;;  %v190_v39 = vadd.f32 %v189_v35, %v170_v22  ;;  %v230_v40 = vadd.f32 %v229_v36, %v218_v2 }
  0x60   :  { %v233_v41 = vadd.f32 %v232_v37, %v221_v25  ;;  %v191_v42 = vadd.f32 %v185_v34, %v180_v30  ;;  %v235_v43 = vsel %vm773_vm4, %v173_v20, 0.0  ;;  %v238_v44 = vsel %vm778_vm5, %v178_v24, 0.0 }
  0x61   :  { %v241_v45 = vsel %vm783_vm6, %v183_v27, 0.0  ;;  %v239_v46 = vadd.f32 %v238_v44, %v227_v33  ;;  %v244_v48 = vsel %vm794_vm8, %v188_v32, 0.0  ;;  %v194_v51 = vstv %s494_s23  ;;  %s366_s23 = scalar_lea.vmem %s263_s10, 256 }
  0x62   :  { %v242_v47 = vadd.f32 %v241_v45, %v230_v40  ;;  %v192_v49 = vadd.f32 %v191_v42, %v190_v39  ;;  %v245_v50 = vadd.f32 %v244_v48, %v233_v41  ;;  %v236_v52 = vadd.f32 %v235_v43, %v224_v28  ;;  %p367_p5 = scmp.ne.s32.totalorder %s263_s10, %s366_s23  ;;  %p372_p7 = scmp.lt.s32.totalorder %s366_s23, %s366_s23 }
  0x64   :  { %v246_v53 = vadd.f32 %v242_v47, %v239_v46  ;;  %v193_v54 = vadd.f32 %v192_v49, %v175_v38  ;;  %p373_p8 = por %p372_p7, %p371_p6 }
  0x66   :  { %v247_v56 = vadd.f32 %v246_v53, %v245_v50  ;;  %v195_v57 = vadd.f32 %v194_v51, %v193_v54  ;;  %p374_p9 = pnand %p373_p8, %p367_p5 }
  0x68   :  { %v248_v58 = vadd.f32 %v247_v56, %v236_v52  ;;  %v196_v59 = vsub.f32 %v195_v57, %v119_v55 }
  0x6a   :  { %v249_v61 = vadd.f32 %v248_v58, %v194_v51  ;;  %v197_v62 = vadd.f32 %v196_v59, %v119_v55  ;;  %v199_v0 = vmul.f32 %v196_v59, %v196_v59 }
  0x6c   :  { %v250_v63 = vsub.f32 %v249_v61, %v204_v60  ;;  %198 = vst [vmem:[#allocation9] sm:$0xff] %v197_v62 }
  0x6e   :  { %v251_v1 = vadd.f32 %v250_v63, %v204_v60  ;;  %v254_v3 = vmul.f32 %v250_v63, %v250_v63 }
  0x70   :  { %253 = vst [vmem:[#allocation9 + $0x8] sm:$0xff] %v251_v1  ;;  %v255_v4 = vadd.f32 %v254_v3, %v199_v0 }
  0x71   :  { %377 = shalt.err (!%p374_p9)
}
  0x72   :  { %s378_s0 = scalar_lea.hbm %s873_s3, 256 }
  0x73   :  { %p379_p10 = scmp.ne.s32.totalorder %s873_s3, %s378_s0  ;;  %p382_p11 = scmp.lt.u32.totalorder %s378_s0, %s873_s3 }
  0x75   :  { %p384_p12 = pnand %p382_p11, %p379_p10 }
  0x77   :  { %387 = shalt.err (!%p384_p12)
}
  0x78   :  { %s945_s22 = smov 8   ;;  %s946_s14 = smov 128   ;;  %256 = vst [vmem:[#allocation10] sm:$0xff] %v255_v4 }
  0x79   :  { %268 = dma.vmem_to_hbm [thread:$0]  %s263_s10, 256, %s873_s3, [#allocation4], %s946_s14, %s946_s14, %s945_s22  }
  0x7a   :  { %s388_s20 = scalar_lea.vmem %s276_s13, 128  ;;  %p393_p0 = scmp.lt.s32.totalorder %s276_s13, %s276_s13 }
  0x7b   :  { %p389_p13 = scmp.ne.s32.totalorder %s276_s13, %s388_s20  ;;  %p394_p1 = scmp.lt.s32.totalorder %s388_s20, %s388_s20 }
  0x7d   :  { %p395_p2 = por %p394_p1, %p393_p0 }
  0x7f   :  { %p396_p3 = pnand %p395_p2, %p389_p13 }
  0x81   :  { %399 = shalt.err (!%p396_p3)
}
  0x82   :  { %s947_s25 = sld [smem:[#allocation17_spill]] }
  0x88   :  { %s400_s26 = scalar_lea.hbm %s947_s25, 128 }
  0x89   :  { %p401_p4 = scmp.ne.s32.totalorder %s947_s25, %s400_s26  ;;  %p404_p5 = scmp.lt.u32.totalorder %s400_s26, %s947_s25 }
  0x8b   :  { %p406_p6 = pnand %p404_p5, %p401_p4 }
  0x8d   :  { %409 = shalt.err (!%p406_p6)
}
  0x8e   :  { %278 = dma.vmem_to_hbm [thread:$0]  %s276_s13, 128, %s947_s25, [#allocation11]  }
  0x8f   :  { %416 = dma.done.wait [#allocation4], 256  }
  0x90   :  { %417 = vsyncadd [#allocation4], 4294967040 }
  0x91   :  { %418 = dma.done.wait [#allocation11], 128  }
  0x92   :  { %419 = vsyncadd [#allocation11], 4294967168 }
  0x93   :  { %285 = vsyncpa [#allocation3], 1 }
  0x94   :  { %286 = vsyncpa [#allocation8], 1 }
  0x95   :  { %287 = vsyncpa [#allocation4], 1 }
  0x96   :  { %288 = vsyncpa [#allocation11], 1 }
  0x97   :  { %289 = vsyncpa [#allocation5], 1 }

</bundles_post_ra>
